<compile_context>
chip_gen: v7x
topology: tpu7x:2x2x1
jax: 0.10.0
libtpu: 0.0.40
codegen_flags: <defaults>
</compile_context>

<pallas_src>
import math
import functools

import jax
import jax.numpy as jnp
from jax import lax
from jax.experimental import pallas as pl
from jax.experimental.pallas import tpu as pltpu

LN_EPS = 1e-5


def gmlp_kernel(x_ref, g1_ref, be1_ref, w1u_ref, b1u_ref, w1v_ref, b1v_ref,
                g2_ref, be2_ref, wsp_ref, bsp_ref, w2_ref, b2_ref,
                o_ref, *, bt, seq, d_ffn):
    """One batch-tile (Bt, S, D) per grid step.  LN -> channel proj 1 (split)
    -> erf GELU -> LN -> spatial gating -> channel proj 2 -> residual."""
    S = seq
    x = x_ref[...]                                   # (Bt, S, D) f32
    D = x.shape[-1]
    xf = x.reshape(bt * S, D)                        # flatten batch into MXU M-dim

    # --- LayerNorm(d_model), f32 ---
    mu = jnp.mean(xf, axis=-1, keepdims=True)
    var = jnp.mean((xf - mu) ** 2, axis=-1, keepdims=True)
    xn = (xf - mu) * lax.rsqrt(var + LN_EPS)
    xn = xn * g1_ref[...] + be1_ref[...]             # (1, D) broadcasts

    # --- channel_projection_1, split into u / v halves (bf16 MXU, f32 acc) ---
    xn_b = xn.astype(jnp.bfloat16)
    u = jnp.dot(xn_b, w1u_ref[...], preferred_element_type=jnp.float32) + b1u_ref[...]
    v = jnp.dot(xn_b, w1v_ref[...], preferred_element_type=jnp.float32) + b1v_ref[...]

    # --- exact (erf) GELU, matching torch F.gelu default ---
    inv_sqrt2 = 1.0 / math.sqrt(2.0)
    u = 0.5 * u * (1.0 + lax.erf(u * inv_sqrt2))
    v = 0.5 * v * (1.0 + lax.erf(v * inv_sqrt2))

    # --- SpatialGatingUnit: LayerNorm(d_ffn) on v ---
    mv = jnp.mean(v, axis=-1, keepdims=True)
    vv = jnp.mean((v - mv) ** 2, axis=-1, keepdims=True)
    vn = (v - mv) * lax.rsqrt(vv + LN_EPS)
    vn = vn * g2_ref[...] + be2_ref[...]

    # Conv1d(seq, seq, 1) == (S, S) matmul over the seq axis, per batch element.
    vn_b = vn.astype(jnp.bfloat16)
    wsp = wsp_ref[...]                               # (S, S) bf16
    bsp = bsp_ref[...]                               # (S, d_ffn) f32, lane-dense

    gated_rows = []
    for b in range(bt):                              # bt is a small static constant
        v_b = vn_b[b * S:(b + 1) * S, :]             # static slice, (S, d_ffn)
        vs = jnp.dot(wsp, v_b, preferred_element_type=jnp.float32) + bsp
        u_b = u[b * S:(b + 1) * S, :]
        gated_rows.append(u_b * vs)
    gated = gated_rows[0] if bt == 1 else jnp.concatenate(gated_rows, axis=0)

    # --- channel_projection_2 (bf16 MXU, f32 acc) + residual ---
    y = jnp.dot(gated.astype(jnp.bfloat16), w2_ref[...],
                preferred_element_type=jnp.float32) + b2_ref[...]
    o_ref[...] = (y + xf).reshape(bt, S, D).astype(o_ref.dtype)


def _pick_batch_tile(B, S, target_rows=256):
    """Fold batch elements so the MXU M-dim is ~target_rows, but keep >=2 grid
    steps when possible so both v7x TensorCores get work."""
    want = max(1, pl.cdiv(target_rows, S))
    cap = max(1, B // 2) if B > 1 else 1
    bt = max(1, min(B, want, cap))
    while B % bt:
        bt -= 1
    return max(bt, 1)


def _vmem_limit_bytes(bt, S, D, F):
    weights = 2 * (2 * D * F + S * S + F * D)          # bf16 matmul weights
    smalls = 4 * (4 * D + 4 * F + S * F)               # LN params, biases, bsp slab
    acts = 4 * bt * S * (3 * D + 6 * F)                # blocks + intermediates (f32)
    est = 3 * (weights + smalls) + 4 * acts + (2 << 20)
    return int(min(max(est, 8 << 20), 48 << 20))       # safe on v5e/v6e/v7x


def gmlp_block(x, params, *, d_ffn, batch_tile=None):
    B, S, D = x.shape
    F = d_ffn
    (g1, be1, w1, b1, g2, be2, wsp, bsp, w2, b2) = params

    bt = batch_tile if batch_tile is not None else _pick_batch_tile(B, S)
    assert B % bt == 0, "batch tile must divide batch"

    bf = jnp.bfloat16
    # Split channel_projection_1, cast matmul weights to bf16; keep LN params
    # and biases in f32.  Pre-broadcast spatial bias to a lane-dense slab.
    w1u = w1[:, :F].astype(bf)
    w1v = w1[:, F:].astype(bf)
    b1u = b1[:, :F]
    b1v = b1[:, F:]
    wsp_b = wsp.astype(bf)
    w2_b = w2.astype(bf)
    bsp_bc = jnp.broadcast_to(bsp, (S, F)).astype(jnp.float32)

    def wspec(shape):
        # full-array block, constant index_map (Pallas DMAs it once)
        return pl.BlockSpec(shape, lambda i: (0,) * len(shape))

    kernel = functools.partial(gmlp_kernel, bt=bt, seq=S, d_ffn=F)

    flops = 2 * B * S * (D * 2 * F + S * F + F * D) + 10 * B * S * (D + 2 * F)
    transcendentals = B * S * (2 * F + 2)
    bytes_accessed = (2 * B * S * D * 4
                      + 2 * (2 * D * F + S * S + F * D)
                      + 4 * (4 * D + 4 * F + S * F))

    return pl.pallas_call(
        kernel,
        out_shape=jax.ShapeDtypeStruct((B, S, D), x.dtype),
        grid_spec=pltpu.PrefetchScalarGridSpec(
            num_scalar_prefetch=0,
            grid=(B // bt,),
            in_specs=[
                pl.BlockSpec((bt, S, D), lambda i: (i, 0, 0)),   # x
                wspec((1, D)),        # norm1 gamma
                wspec((1, D)),        # norm1 beta
                wspec((D, F)),        # W1 (u half), bf16
                wspec((1, F)),        # b1 (u half)
                wspec((D, F)),        # W1 (v half), bf16
                wspec((1, F)),        # b1 (v half)
                wspec((1, F)),        # norm2 gamma
                wspec((1, F)),        # norm2 beta
                wspec((S, S)),        # spatial projection weight, bf16
                wspec((S, F)),        # spatial projection bias, lane-dense slab
                wspec((F, D)),        # W2, bf16
                wspec((1, D)),        # b2
            ],
            out_specs=pl.BlockSpec((bt, S, D), lambda i: (i, 0, 0)),
        ),
        compiler_params=pltpu.CompilerParams(
            dimension_semantics=("parallel",),
            vmem_limit_bytes=_vmem_limit_bytes(bt, S, D, F)),
        cost_estimate=pl.CostEstimate(
            flops=int(flops),
            transcendentals=int(transcendentals),
            bytes_accessed=int(bytes_accessed)),
    )(x, g1, be1, w1u, b1u, w1v, b1v, g2, be2, wsp_b, bsp_bc, w2_b, b2)


def gmlp_reference(x, params, *, d_ffn):
    """Pure-JAX reference mirroring the PyTorch module, with the same
    bf16-operand / f32-accumulate matmul precision as the kernel."""
    (g1, be1, w1, b1, g2, be2, wsp, bsp, w2, b2) = params
    bf, f32 = jnp.bfloat16, jnp.float32

    def ln(t, g, b):
        mu = jnp.mean(t, axis=-1, keepdims=True)
        var = jnp.mean((t - mu) ** 2, axis=-1, keepdims=True)
        return (t - mu) * lax.rsqrt(var + LN_EPS) * g + b

    residual = x
    h = ln(x, g1, be1)
    h = jnp.einsum("bsd,df->bsf", h.astype(bf), w1.astype(bf),
                   preferred_element_type=f32) + b1
    h = 0.5 * h * (1.0 + lax.erf(h / math.sqrt(2.0)))
    u, v = h[..., :d_ffn], h[..., d_ffn:]
    v = ln(v, g2, be2)
    v = jnp.einsum("ij,bjf->bif", wsp.astype(bf), v.astype(bf),
                   preferred_element_type=f32) + bsp[None, :, :]
    gated = u * v
    y = jnp.einsum("bsf,fd->bsd", gated.astype(bf), w2.astype(bf),
                   preferred_element_type=f32) + b2
    return y + residual


def make_params(key, d_model, d_ffn, seq_len):
    F2 = 2 * d_ffn
    ks = jax.random.split(key, 8)
    g1 = jnp.ones((1, d_model), jnp.float32) + 0.05 * jax.random.normal(ks[0], (1, d_model))
    be1 = 0.05 * jax.random.normal(ks[1], (1, d_model))
    w1 = 0.1 * jax.random.normal(ks[2], (d_model, F2))
    b1 = 0.05 * jax.random.normal(ks[3], (1, F2))
    g2 = jnp.ones((1, d_ffn), jnp.float32) + 0.05 * jax.random.normal(ks[4], (1, d_ffn))
    be2 = 0.05 * jax.random.normal(ks[5], (1, d_ffn))
    wsp = 0.1 * jax.random.normal(ks[6], (seq_len, seq_len))
    bsp = jnp.ones((seq_len, 1), jnp.float32)   # nn.init.constant_(bias, 1.0)
    w2 = 0.1 * jax.random.normal(ks[7], (d_ffn, d_model))
    b2 = jnp.zeros((1, d_model), jnp.float32)
    return tuple(p.astype(jnp.float32)
                 for p in (g1, be1, w1, b1, g2, be2, wsp, bsp, w2, b2))


if __name__ == "__main__":
    B, S, D_MODEL, D_FFN = 4, 8, 16, 32

    key = jax.random.PRNGKey(0)
    kx, kp = jax.random.split(key)
    x = jax.random.normal(kx, (B, S, D_MODEL), dtype=jnp.float32)
    params = make_params(kp, D_MODEL, D_FFN, S)

    out = gmlp_block(x, params, d_ffn=D_FFN)
    out = jax.block_until_ready(out)

    ref = gmlp_reference(x, params, d_ffn=D_FFN)
    assert out.shape == (B, S, D_MODEL)
    err = float(jnp.max(jnp.abs(out - ref)))
    assert err < 2e-3, f"mismatch vs reference: max abs err = {err}"

    print("KERNEL_OK")
</pallas_src>

<mosaic_0001>
module attributes {stable_mosaic.version = 11 : i64} {
  func.func @gmlp_kernel(%arg0: i32, %arg1: memref<2x8x16xf32, #tpu.memory_space<vmem>>, %arg2: memref<1x16xf32, #tpu.memory_space<vmem>>, %arg3: memref<1x16xf32, #tpu.memory_space<vmem>>, %arg4: memref<16x32xbf16, #tpu.memory_space<vmem>>, %arg5: memref<1x32xf32, #tpu.memory_space<vmem>>, %arg6: memref<16x32xbf16, #tpu.memory_space<vmem>>, %arg7: memref<1x32xf32, #tpu.memory_space<vmem>>, %arg8: memref<1x32xf32, #tpu.memory_space<vmem>>, %arg9: memref<1x32xf32, #tpu.memory_space<vmem>>, %arg10: memref<8x8xbf16, #tpu.memory_space<vmem>>, %arg11: memref<8x32xf32, #tpu.memory_space<vmem>>, %arg12: memref<32x16xbf16, #tpu.memory_space<vmem>>, %arg13: memref<1x16xf32, #tpu.memory_space<vmem>>, %arg14: memref<2x8x16xf32, #tpu.memory_space<vmem>>) attributes {dimension_semantics = [#tpu.dimension_semantics<parallel>], iteration_bounds = array<i64: 2>, scalar_prefetch = 0 : i64, scratch_operands = 0 : i64, tpu.core_type = #tpu.core_type<tc>, window_params = [{transform_indices = @transform_0, window_bounds = array<i64: 2, 8, 16>}, {pipeline_mode = #tpu.pipeline_mode<synchronous>, transform_indices = @transform_1, window_bounds = array<i64: 1, 16>}, {pipeline_mode = #tpu.pipeline_mode<synchronous>, transform_indices = @transform_2, window_bounds = array<i64: 1, 16>}, {pipeline_mode = #tpu.pipeline_mode<synchronous>, transform_indices = @transform_3, window_bounds = array<i64: 16, 32>}, {pipeline_mode = #tpu.pipeline_mode<synchronous>, transform_indices = @transform_4, window_bounds = array<i64: 1, 32>}, {pipeline_mode = #tpu.pipeline_mode<synchronous>, transform_indices = @transform_5, window_bounds = array<i64: 16, 32>}, {pipeline_mode = #tpu.pipeline_mode<synchronous>, transform_indices = @transform_6, window_bounds = array<i64: 1, 32>}, {pipeline_mode = #tpu.pipeline_mode<synchronous>, transform_indices = @transform_7, window_bounds = array<i64: 1, 32>}, {pipeline_mode = #tpu.pipeline_mode<synchronous>, transform_indices = @transform_8, window_bounds = array<i64: 1, 32>}, {pipeline_mode = #tpu.pipeline_mode<synchronous>, transform_indices = @transform_9, window_bounds = array<i64: 8, 8>}, {pipeline_mode = #tpu.pipeline_mode<synchronous>, transform_indices = @transform_10, window_bounds = array<i64: 8, 32>}, {pipeline_mode = #tpu.pipeline_mode<synchronous>, transform_indices = @transform_11, window_bounds = array<i64: 32, 16>}, {pipeline_mode = #tpu.pipeline_mode<synchronous>, transform_indices = @transform_12, window_bounds = array<i64: 1, 16>}, {transform_indices = @transform_13, window_bounds = array<i64: 2, 8, 16>}]} {
    %c0 = arith.constant 0 : index
    %c0_0 = arith.constant 0 : index
    %c0_1 = arith.constant 0 : index
    %0 = vector.load %arg1[%c0, %c0_0, %c0_1] : memref<2x8x16xf32, #tpu.memory_space<vmem>>, vector<2x8x16xf32>
    %1 = vector.shape_cast %0 : vector<2x8x16xf32> to vector<16x16xf32>
    %cst = arith.constant dense<0.000000e+00> : vector<16xf32>
    %2 = vector.multi_reduction <add>, %1, %cst [1] : vector<16x16xf32> to vector<16xf32>
    %3 = vector.shape_cast %2 : vector<16xf32> to vector<16x1xf32>
    %cst_2 = arith.constant 1.600000e+01 : f32
    %4 = vector.broadcast %cst_2 : f32 to vector<16x1xf32>
    %5 = arith.divf %3, %4 : vector<16x1xf32>
    %6 = vector.broadcast %5 : vector<16x1xf32> to vector<16x16xf32>
    %7 = arith.subf %1, %6 : vector<16x16xf32>
    %8 = arith.mulf %7, %7 : vector<16x16xf32>
    %cst_3 = arith.constant dense<0.000000e+00> : vector<16xf32>
    %9 = vector.multi_reduction <add>, %8, %cst_3 [1] : vector<16x16xf32> to vector<16xf32>
    %10 = vector.shape_cast %9 : vector<16xf32> to vector<16x1xf32>
    %cst_4 = arith.constant 1.600000e+01 : f32
    %11 = vector.broadcast %cst_4 : f32 to vector<16x1xf32>
    %12 = arith.divf %10, %11 : vector<16x1xf32>
    %13 = vector.broadcast %5 : vector<16x1xf32> to vector<16x16xf32>
    %14 = arith.subf %1, %13 : vector<16x16xf32>
    %cst_5 = arith.constant 9.99999974E-6 : f32
    %15 = vector.broadcast %cst_5 : f32 to vector<16x1xf32>
    %16 = arith.addf %12, %15 : vector<16x1xf32>
    %17 = math.rsqrt %16 : vector<16x1xf32>
    %18 = vector.broadcast %17 : vector<16x1xf32> to vector<16x16xf32>
    %19 = arith.mulf %14, %18 : vector<16x16xf32>
    %c0_6 = arith.constant 0 : index
    %c0_7 = arith.constant 0 : index
    %20 = vector.load %arg2[%c0_6, %c0_7] : memref<1x16xf32, #tpu.memory_space<vmem>>, vector<1x16xf32>
    %21 = vector.broadcast %20 : vector<1x16xf32> to vector<16x16xf32>
    %22 = arith.mulf %19, %21 : vector<16x16xf32>
    %c0_8 = arith.constant 0 : index
    %c0_9 = arith.constant 0 : index
    %23 = vector.load %arg3[%c0_8, %c0_9] : memref<1x16xf32, #tpu.memory_space<vmem>>, vector<1x16xf32>
    %24 = vector.broadcast %23 : vector<1x16xf32> to vector<16x16xf32>
    %25 = arith.addf %22, %24 : vector<16x16xf32>
    %26 = arith.truncf %25 : vector<16x16xf32> to vector<16x16xbf16>
    %c0_10 = arith.constant 0 : index
    %c0_11 = arith.constant 0 : index
    %27 = vector.load %arg4[%c0_10, %c0_11] : memref<16x32xbf16, #tpu.memory_space<vmem>>, vector<16x32xbf16>
    %cst_12 = arith.constant dense<0.000000e+00> : vector<16x32xf32>
    %28 = tpu.matmul %26, %27, %cst_12 {dimension_numbers = #tpu.dot_dimension_numbers<[1], [0], [0], [1], [0, 0, 1, 1], [], []>} : vector<16x16xbf16>, vector<16x32xbf16>, vector<16x32xf32> -> vector<16x32xf32>
    %c0_13 = arith.constant 0 : index
    %c0_14 = arith.constant 0 : index
    %29 = vector.load %arg5[%c0_13, %c0_14] : memref<1x32xf32, #tpu.memory_space<vmem>>, vector<1x32xf32>
    %30 = vector.broadcast %29 : vector<1x32xf32> to vector<16x32xf32>
    %31 = arith.addf %28, %30 : vector<16x32xf32>
    %c0_15 = arith.constant 0 : index
    %c0_16 = arith.constant 0 : index
    %32 = vector.load %arg6[%c0_15, %c0_16] : memref<16x32xbf16, #tpu.memory_space<vmem>>, vector<16x32xbf16>
    %cst_17 = arith.constant dense<0.000000e+00> : vector<16x32xf32>
    %33 = tpu.matmul %26, %32, %cst_17 {dimension_numbers = #tpu.dot_dimension_numbers<[1], [0], [0], [1], [0, 0, 1, 1], [], []>} : vector<16x16xbf16>, vector<16x32xbf16>, vector<16x32xf32> -> vector<16x32xf32>
    %c0_18 = arith.constant 0 : index
    %c0_19 = arith.constant 0 : index
    %34 = vector.load %arg7[%c0_18, %c0_19] : memref<1x32xf32, #tpu.memory_space<vmem>>, vector<1x32xf32>
    %35 = vector.broadcast %34 : vector<1x32xf32> to vector<16x32xf32>
    %36 = arith.addf %33, %35 : vector<16x32xf32>
    %cst_20 = arith.constant 5.000000e-01 : f32
    %37 = vector.broadcast %cst_20 : f32 to vector<16x32xf32>
    %38 = arith.mulf %37, %31 : vector<16x32xf32>
    %cst_21 = arith.constant 0.707106769 : f32
    %39 = vector.broadcast %cst_21 : f32 to vector<16x32xf32>
    %40 = arith.mulf %31, %39 : vector<16x32xf32>
    %41 = math.erf %40 : vector<16x32xf32>
    %cst_22 = arith.constant 1.000000e+00 : f32
    %42 = vector.broadcast %cst_22 : f32 to vector<16x32xf32>
    %43 = arith.addf %42, %41 : vector<16x32xf32>
    %44 = arith.mulf %38, %43 : vector<16x32xf32>
    %cst_23 = arith.constant 5.000000e-01 : f32
    %45 = vector.broadcast %cst_23 : f32 to vector<16x32xf32>
    %46 = arith.mulf %45, %36 : vector<16x32xf32>
    %cst_24 = arith.constant 0.707106769 : f32
    %47 = vector.broadcast %cst_24 : f32 to vector<16x32xf32>
    %48 = arith.mulf %36, %47 : vector<16x32xf32>
    %49 = math.erf %48 : vector<16x32xf32>
    %cst_25 = arith.constant 1.000000e+00 : f32
    %50 = vector.broadcast %cst_25 : f32 to vector<16x32xf32>
    %51 = arith.addf %50, %49 : vector<16x32xf32>
    %52 = arith.mulf %46, %51 : vector<16x32xf32>
    %cst_26 = arith.constant dense<0.000000e+00> : vector<16xf32>
    %53 = vector.multi_reduction <add>, %52, %cst_26 [1] : vector<16x32xf32> to vector<16xf32>
    %54 = vector.shape_cast %53 : vector<16xf32> to vector<16x1xf32>
    %cst_27 = arith.constant 3.200000e+01 : f32
    %55 = vector.broadcast %cst_27 : f32 to vector<16x1xf32>
    %56 = arith.divf %54, %55 : vector<16x1xf32>
    %57 = vector.broadcast %56 : vector<16x1xf32> to vector<16x32xf32>
    %58 = arith.subf %52, %57 : vector<16x32xf32>
    %59 = arith.mulf %58, %58 : vector<16x32xf32>
    %cst_28 = arith.constant dense<0.000000e+00> : vector<16xf32>
    %60 = vector.multi_reduction <add>, %59, %cst_28 [1] : vector<16x32xf32> to vector<16xf32>
    %61 = vector.shape_cast %60 : vector<16xf32> to vector<16x1xf32>
    %cst_29 = arith.constant 3.200000e+01 : f32
    %62 = vector.broadcast %cst_29 : f32 to vector<16x1xf32>
    %63 = arith.divf %61, %62 : vector<16x1xf32>
    %64 = vector.broadcast %56 : vector<16x1xf32> to vector<16x32xf32>
    %65 = arith.subf %52, %64 : vector<16x32xf32>
    %cst_30 = arith.constant 9.99999974E-6 : f32
    %66 = vector.broadcast %cst_30 : f32 to vector<16x1xf32>
    %67 = arith.addf %63, %66 : vector<16x1xf32>
    %68 = math.rsqrt %67 : vector<16x1xf32>
    %69 = vector.broadcast %68 : vector<16x1xf32> to vector<16x32xf32>
    %70 = arith.mulf %65, %69 : vector<16x32xf32>
    %c0_31 = arith.constant 0 : index
    %c0_32 = arith.constant 0 : index
    %71 = vector.load %arg8[%c0_31, %c0_32] : memref<1x32xf32, #tpu.memory_space<vmem>>, vector<1x32xf32>
    %72 = vector.broadcast %71 : vector<1x32xf32> to vector<16x32xf32>
    %73 = arith.mulf %70, %72 : vector<16x32xf32>
    %c0_33 = arith.constant 0 : index
    %c0_34 = arith.constant 0 : index
    %74 = vector.load %arg9[%c0_33, %c0_34] : memref<1x32xf32, #tpu.memory_space<vmem>>, vector<1x32xf32>
    %75 = vector.broadcast %74 : vector<1x32xf32> to vector<16x32xf32>
    %76 = arith.addf %73, %75 : vector<16x32xf32>
    %77 = arith.truncf %76 : vector<16x32xf32> to vector<16x32xbf16>
    %c0_35 = arith.constant 0 : index
    %c0_36 = arith.constant 0 : index
    %78 = vector.load %arg10[%c0_35, %c0_36] : memref<8x8xbf16, #tpu.memory_space<vmem>>, vector<8x8xbf16>
    %c0_37 = arith.constant 0 : index
    %c0_38 = arith.constant 0 : index
    %79 = vector.load %arg11[%c0_37, %c0_38] : memref<8x32xf32, #tpu.memory_space<vmem>>, vector<8x32xf32>
    %80 = vector.extract_strided_slice %77 {offsets = [0, 0], sizes = [8, 32], strides = [1, 1]} : vector<16x32xbf16> to vector<8x32xbf16>
    %cst_39 = arith.constant dense<0.000000e+00> : vector<8x32xf32>
    %81 = tpu.matmul %78, %80, %cst_39 {dimension_numbers = #tpu.dot_dimension_numbers<[1], [0], [0], [1], [0, 0, 1, 1], [], []>} : vector<8x8xbf16>, vector<8x32xbf16>, vector<8x32xf32> -> vector<8x32xf32>
    %82 = arith.addf %81, %79 : vector<8x32xf32>
    %83 = vector.extract_strided_slice %44 {offsets = [0, 0], sizes = [8, 32], strides = [1, 1]} : vector<16x32xf32> to vector<8x32xf32>
    %84 = arith.mulf %83, %82 : vector<8x32xf32>
    %85 = vector.extract_strided_slice %77 {offsets = [8, 0], sizes = [8, 32], strides = [1, 1]} : vector<16x32xbf16> to vector<8x32xbf16>
    %cst_40 = arith.constant dense<0.000000e+00> : vector<8x32xf32>
    %86 = tpu.matmul %78, %85, %cst_40 {dimension_numbers = #tpu.dot_dimension_numbers<[1], [0], [0], [1], [0, 0, 1, 1], [], []>} : vector<8x8xbf16>, vector<8x32xbf16>, vector<8x32xf32> -> vector<8x32xf32>
    %87 = arith.addf %86, %79 : vector<8x32xf32>
    %88 = vector.extract_strided_slice %44 {offsets = [8, 0], sizes = [8, 32], strides = [1, 1]} : vector<16x32xf32> to vector<8x32xf32>
    %89 = arith.mulf %88, %87 : vector<8x32xf32>
    %90 = tpu.concatenate %84, %89 in 0 : vector<8x32xf32>, vector<8x32xf32> -> vector<16x32xf32>
    %91 = arith.truncf %90 : vector<16x32xf32> to vector<16x32xbf16>
    %c0_41 = arith.constant 0 : index
    %c0_42 = arith.constant 0 : index
    %92 = vector.load %arg12[%c0_41, %c0_42] : memref<32x16xbf16, #tpu.memory_space<vmem>>, vector<32x16xbf16>
    %cst_43 = arith.constant dense<0.000000e+00> : vector<16x16xf32>
    %93 = tpu.matmul %91, %92, %cst_43 {dimension_numbers = #tpu.dot_dimension_numbers<[1], [0], [0], [1], [0, 0, 1, 1], [], []>} : vector<16x32xbf16>, vector<32x16xbf16>, vector<16x16xf32> -> vector<16x16xf32>
    %c0_44 = arith.constant 0 : index
    %c0_45 = arith.constant 0 : index
    %94 = vector.load %arg13[%c0_44, %c0_45] : memref<1x16xf32, #tpu.memory_space<vmem>>, vector<1x16xf32>
    %95 = vector.broadcast %94 : vector<1x16xf32> to vector<16x16xf32>
    %96 = arith.addf %93, %95 : vector<16x16xf32>
    %97 = arith.addf %96, %1 : vector<16x16xf32>
    %98 = vector.shape_cast %97 : vector<16x16xf32> to vector<2x8x16xf32>
    %c0_46 = arith.constant 0 : index
    %c0_47 = arith.constant 0 : index
    %c0_48 = arith.constant 0 : index
    %99 = vector.load %arg14[%c0_46, %c0_47, %c0_48] : memref<2x8x16xf32, #tpu.memory_space<vmem>>, vector<2x8x16xf32>
    tpu.vector_store %arg14[%c0_46, %c0_47, %c0_48], %98 {strides = array<i32>} : memref<2x8x16xf32, #tpu.memory_space<vmem>>, vector<2x8x16xf32>,
    return
  }
  func.func @transform_0(%arg0: i32) -> (i32, i32, i32) {
    %c0_i32 = arith.constant 0 : i32
    %c0_i32_0 = arith.constant 0 : i32
    %c0_i32_1 = arith.constant 0 : i32
    return %arg0, %c0_i32, %c0_i32_0 : i32, i32, i32
  }
  func.func @transform_1(%arg0: i32) -> (i32, i32) {
    %c0_i32 = arith.constant 0 : i32
    %c0_i32_0 = arith.constant 0 : i32
    %c0_i32_1 = arith.constant 0 : i32
    return %c0_i32, %c0_i32_0 : i32, i32
  }
  func.func @transform_2(%arg0: i32) -> (i32, i32) {
    %c0_i32 = arith.constant 0 : i32
    %c0_i32_0 = arith.constant 0 : i32
    %c0_i32_1 = arith.constant 0 : i32
    return %c0_i32, %c0_i32_0 : i32, i32
  }
  func.func @transform_3(%arg0: i32) -> (i32, i32) {
    %c0_i32 = arith.constant 0 : i32
    %c0_i32_0 = arith.constant 0 : i32
    %c0_i32_1 = arith.constant 0 : i32
    return %c0_i32, %c0_i32_0 : i32, i32
  }
  func.func @transform_4(%arg0: i32) -> (i32, i32) {
    %c0_i32 = arith.constant 0 : i32
    %c0_i32_0 = arith.constant 0 : i32
    %c0_i32_1 = arith.constant 0 : i32
    return %c0_i32, %c0_i32_0 : i32, i32
  }
  func.func @transform_5(%arg0: i32) -> (i32, i32) {
    %c0_i32 = arith.constant 0 : i32
    %c0_i32_0 = arith.constant 0 : i32
    %c0_i32_1 = arith.constant 0 : i32
    return %c0_i32, %c0_i32_0 : i32, i32
  }
  func.func @transform_6(%arg0: i32) -> (i32, i32) {
    %c0_i32 = arith.constant 0 : i32
    %c0_i32_0 = arith.constant 0 : i32
    %c0_i32_1 = arith.constant 0 : i32
    return %c0_i32, %c0_i32_0 : i32, i32
  }
  func.func @transform_7(%arg0: i32) -> (i32, i32) {
    %c0_i32 = arith.constant 0 : i32
    %c0_i32_0 = arith.constant 0 : i32
    %c0_i32_1 = arith.constant 0 : i32
    return %c0_i32, %c0_i32_0 : i32, i32
  }
  func.func @transform_8(%arg0: i32) -> (i32, i32) {
    %c0_i32 = arith.constant 0 : i32
    %c0_i32_0 = arith.constant 0 : i32
    %c0_i32_1 = arith.constant 0 : i32
    return %c0_i32, %c0_i32_0 : i32, i32
  }
  func.func @transform_9(%arg0: i32) -> (i32, i32) {
    %c0_i32 = arith.constant 0 : i32
    %c0_i32_0 = arith.constant 0 : i32
    %c0_i32_1 = arith.constant 0 : i32
    return %c0_i32, %c0_i32_0 : i32, i32
  }
  func.func @transform_10(%arg0: i32) -> (i32, i32) {
    %c0_i32 = arith.constant 0 : i32
    %c0_i32_0 = arith.constant 0 : i32
    %c0_i32_1 = arith.constant 0 : i32
    return %c0_i32, %c0_i32_0 : i32, i32
  }
  func.func @transform_11(%arg0: i32) -> (i32, i32) {
    %c0_i32 = arith.constant 0 : i32
    %c0_i32_0 = arith.constant 0 : i32
    %c0_i32_1 = arith.constant 0 : i32
    return %c0_i32, %c0_i32_0 : i32, i32
  }
  func.func @transform_12(%arg0: i32) -> (i32, i32) {
    %c0_i32 = arith.constant 0 : i32
    %c0_i32_0 = arith.constant 0 : i32
    %c0_i32_1 = arith.constant 0 : i32
    return %c0_i32, %c0_i32_0 : i32, i32
  }
  func.func @transform_13(%arg0: i32) -> (i32, i32, i32) {
    %c0_i32 = arith.constant 0 : i32
    %c0_i32_0 = arith.constant 0 : i32
    %c0_i32_1 = arith.constant 0 : i32
    return %arg0, %c0_i32, %c0_i32_0 : i32, i32, i32
  }
}

</mosaic_0001>

<bundles_post_ra>
// kernel: tpu_custom_call.1
= control target key start
LH: loop header
LB: loop body
LE: loop exit
PB: predicated region body
PF: predicated region fallthrough
CT: control target
= control target key end

     0   :  { %18 = vsyncpa [#allocation3], 0  ;;  %s1522_s0 = inlined_call_operand.hbm [shape: f32[4,8,16], index: 0, kind: input, shape index: {}]   ;;  %s1523_s1 = inlined_call_operand.vmem [shape: f32[1,16], index: 1, kind: input, shape index: {}]   ;;  %s1524_s2 = inlined_call_operand.vmem [shape: f32[1,16], index: 2, kind: input, shape index: {}]   ;;  %s1525_s3 = inlined_call_operand.vmem [shape: bf16[16,32], index: 3, kind: input, shape index: {}]   ;;  %s1526_s4 = inlined_call_operand.vmem [shape: f32[1,32], index: 4, kind: input, shape index: {}]   ;;  %s1527_s5 = inlined_call_operand.vmem [shape: bf16[16,32], index: 5, kind: input, shape index: {}]   ;;  %s1528_s6 = inlined_call_operand.vmem [shape: f32[1,32], index: 6, kind: input, shape index: {}]   ;;  %s1529_s7 = inlined_call_operand.vmem [shape: f32[1,32], index: 7, kind: input, shape index: {}]   ;;  %s1530_s8 = inlined_call_operand.vmem [shape: f32[1,32], index: 8, kind: input, shape index: {}]   ;;  %s1531_s9 = inlined_call_operand.vmem [shape: bf16[8,8], index: 9, kind: input, shape index: {}]   ;;  %s1532_s10 = inlined_call_operand.vmem [shape: f32[8,32], index: 10, kind: input, shape index: {}]   ;;  %s1533_s11 = inlined_call_operand.vmem [shape: bf16[32,16], index: 11, kind: input, shape index: {}]   ;;  %s1534_s12 = inlined_call_operand.vmem [shape: f32[1,16], index: 12, kind: input, shape index: {}]   ;;  %s1535_s13 = inlined_call_operand.hbm [shape: f32[4,8,16], index: 13, kind: output, shape index: {}]  }
   0x1   :  { %20 = vsyncpa [#allocation3 + $0x1], 0 }
   0x2   :  { %21 = vsyncpa [#allocation4], 0 }
   0x3   :  { %23 = vsyncpa [#allocation4 + $0x1], 0  ;;  %s1272_s25 = smov 0   ;;  %s1274_s26 = smov 0  }
   0x4   :  { %s1276_s27 = smov 0   ;;  %s1278_s28 = smov 0  }
   0x5 LB: > { %1541 = sst [smem:[#allocation8_spill]] %s1180_s25  ;;  %s1293_s29 = sadd.s32 4294967295, %s1192_s28   ;;  %s1192_s28 = sphi %s1278_s28, %s1554_s28   ;;  %s1188_s27 = sphi %s1276_s27, %s1556_s27   ;;  %s1184_s26 = sphi %s1274_s26, %s1558_s26   ;;  %s1180_s25 = sphi %s1272_s25, %s1557_s25  }
   0x6   : > { %1542 = sst [smem:[#allocation9_spill]] %s1188_s27  ;;  %s949_s30 = sadd.s32 4294967294, %s1192_s28  }
   0x7   : > { %s1297_s14 = sadd.s32 1, %s1192_s28   ;;  %s36_s15 = sadd.s32 1, %s1188_s27 }
   0x8   : > { %1543 = sst [smem:[#allocation10_spill]] %s1297_s14  ;;  %s33_s16 = ssub.s32 %s1192_s28, %s1297_s14 }
   0x9   : > { %p43_p0 = scmp.ne.s32.totalorder %s1188_s27, %s1184_s26  ;;  %p34_p1 = scmp.eq.s32.totalorder %s33_s16, 0 }
   0xa   : > { %p44_p2 = scmp.eq.s32.totalorder %s1192_s28, 0  ;;  %p49_p3 = scmp.ne.s32.totalorder %s1184_s26, %s1180_s25 }
   0xb   : > { %p50_p4 = scmp.eq.s32.totalorder %s1293_s29, 0  ;;  %p325_p7 = scmp.eq.s32.totalorder %s1293_s29, 1 }
   0xc   : > { %s1309_s17 = scalar_select %p34_p1, %s1188_s27, %s36_s15  }
   0xd   : > { %p1311_p5 = por %p44_p2, %p43_p0  ;;  %p1315_p6 = por %p50_p4, %p49_p3 }
   0xe   : > { %1544 = sst [smem:[#allocation11_spill]] %s1309_s17  ;;  %p331_p8 = scmp.eq.s32.totalorder %s949_s30, 1 }
   0xf   : > { %p1036_p10 = scmp.lt.s32.totalorder %s1192_s28, 2  ;;  %p1322_p11 = por %p325_p7, %p43_p0 }
  0x10   : > { %p1326_p12 = por %p331_p8, %p49_p3  ;;  %s387_s22 = sand.u32 1, %s1188_s27  }
  0x11   : > { %s1547_s20 = scalar_select %p1322_p11, 1, 0 }
  0x12   : > { %s1548_s21 = scalar_select %p1326_p12, 1, 0 }
  0x13   : > { %s979_s23 = sshll.u32 %s1192_s28, 8  ;;  %s952_s24 = sshll.u32 %s387_s22, 4 }
  0x14   : > { %s1335_s17 = scalar_lea.hbm %s1522_s0, %s979_s23  ;;  %s391_s30 = scalar_lea.vmem [#allocation2], %s952_s24 }
  0x15   : > { %s398_s14 = sshll.u32 %s391_s30, 4  ;;  %p1339_p13 = pnand %p1036_p10, %p1311_p5  ;;  %s1343_s14 = int_to_ptr.vmem [resolvable:$true] %s398_s14 }
  0x16   : > { %s1345_s27 = scalar_lea.sflag [#allocation3], %s387_s22  ;;  %s1096_s15 = scalar_lea.hbm %s1335_s17, 256 }
  0x17   : > { %p1097_p0 = scmp.ne.s32.totalorder %s1335_s17, %s1096_s15  ;;  %p1098_p1 = pneg %p1339_p13 }
  0x18   : > { %s1101_s24 = scalar_lea.hbm %s1522_s0, 512  ;;  %p1102_p4 = scmp.lt.u32.totalorder %s1335_s17, %s1522_s0 }
  0x19   : > { %p1099_p2 = pnand %p1098_p1, %p1097_p0  ;;  %p1103_p5 = scmp.lt.u32.totalorder %s1101_s24, %s1096_s15 }
  0x1a   : > { %p1105_p8 = scmp.lt.u32.totalorder %s1096_s15, %s1335_s17 }
  0x1b   : > { %p1100_p3 = pneg %p1099_p2  ;;  %p1104_p7 = por %p1103_p5, %p1102_p4 }
  0x1d   : > { %p1106_p10 = por %p1105_p8, %p1104_p7 }
  0x1f   : > { %p1107_p9 = pnand %p1106_p10, %p1100_p3 }
  0x21   : > { %1110 = shalt.err (!%p1107_p9)
}
  0x22   : > { %s1111_s22 = scalar_lea.vmem %s1343_s14, 256  ;;  %s1194_s23 = smov [#allocation2]  }
  0x23   : > { %p1112_p0 = scmp.ne.s32.totalorder %s1343_s14, %s1111_s22  ;;  %s1116_s18 = sshll.u32 %s1194_s23, 4  ;;  %s1117_s18 = int_to_ptr.vmem [resolvable:$false] %s1116_s18 }
  0x24   : > { %s1118_s16 = scalar_lea.vmem %s1117_s18, 512  ;;  %p1119_p11 = scmp.lt.s32.totalorder %s1343_s14, %s1117_s18 }
  0x25   : > { %p1114_p2 = pnand %p1112_p0, %p1098_p1  ;;  %p1120_p4 = scmp.lt.s32.totalorder %s1118_s16, %s1111_s22 }
  0x27   : > { %p1115_p12 = pneg %p1114_p2  ;;  %p1121_p5 = por %p1120_p4, %p1119_p11 }
  0x29   : > { %p1122_p7 = pnand %p1121_p5, %p1115_p12 }
  0x2b   : > { %1125 = shalt.err (!%p1122_p7)
}
  0x2c   : > { %s1195_s15 = smov 128   ;;  %s1196_s24 = smov 8  }
  0x2d   : > { %1031 = dma.hbm_to_vmem [thread:$0]  (!%p1339_p13), %s1335_s17, 256, %s1343_s14, %s1345_s27, %s1195_s15, %s1195_s15, %s1196_s24  }
  0x2e   : > { %p955_p9 = scmp.ge.s32.totalorder %s1192_s28, 1  ;;  %p406_p1 = scmp.lt.s32.totalorder %s1192_s28, 3 }
  0x30   : > { %p407_p3 = pnand %p955_p9, %p406_p1 }
  0x31   : > { %s1376_s30 = sand.u32 (!%p407_p3), 1, %s1184_s26  }
  0x32   : > { %410 = sbr.rel (%p407_p3) target bundleno = 1383 (0x567), region = 72  ;;  %s956_s22 = sshll.u32 (!%p407_p3), %s1376_s30, 4 }
  0x33   : > { %s413_s23 = scalar_lea.sflag (!%p407_p3), [#allocation3], %s1376_s30  ;;  %s416_s18 = scalar_lea.vmem (!%p407_p3), [#allocation2], %s956_s22 }
  0x39   : > { %1171 = dma.done.wait (%p1315_p6), %s413_s23, 256  }
  0x3a   : > { %1173 = vsyncadd (%p1315_p6), %s413_s23, 4294967040  ;;  %vm464_vm0 = vcmask 130048   ;;  %v1386_v0 = vld [vmem:[%s416_s18] sm:$0xff]  ;;  %v1388_v1 = vld [vmem:[%s416_s18 + $0x8] sm:$0xff]  ;;  %v1197_v16 = vmov 0.0   ;;  %vm1198_vm1 = vmmov 0  }
  0x3b   : > { %v465_v2 = vsel %vm464_vm0, %v1386_v0, 0.0  ;;  %v468_v3 = vsel %vm464_vm0, %v1388_v1, 0.0  ;;  %v1076_v14 = vld [vmem:[%s1525_s3] sm:$0xff]   ;;  %992 = vmatprep.subr.bf16.mxu0 %v1197_v16  ;;  %998 = vmatprep.subr.bf16.mxu1 %v1197_v16  ;;  %vm646_vm2 = vcmask 261120   ;;  %vm699_vm3 = vcmask 1043456   ;;  %s980_s15 = sshll.u32 %s1293_s29, 8 }
  0x3c   : > { %466 = vadd.xlane.f32.xlu0 %v465_v2  ;;  %v1077_v15 = vld [vmem:[%s1527_s5] sm:$0xff]   ;;  %993 = vmatpush3.bf16.msra.mxu0 %v1076_v14  ;;  %vm695_vm4 = vcmask 64512   ;;  %s458_s24 = scalar_lea.vmem [#allocation5], %s956_s22  ;;  %s1473_s27 = scalar_lea.hbm %s1535_s13, %s980_s15 }
  0x3d   : > { %999 = vmatpush3.bf16.msra.mxu1 %v1077_v15  ;;  %994 = vmatprep.mubr.msk.bf16.mxu0 %vm1198_vm1, %v1197_v16  ;;  %v958_v25 = vld [vmem:[%s1523_s1] ss:$0 sm:$0xff]  ;;  %s876_s23 = sshll.u32 %s458_s24, 4  ;;  %s863_s29 = scalar_lea.sflag [#allocation4], %s1376_s30  ;;  %s1475_s23 = int_to_ptr.vmem [resolvable:$true] %s876_s23 }
  0x3e   : > { %1000 = vmatprep.mubr.msk.bf16.mxu1 %vm1198_vm1, %v1197_v16  ;;  %1004 = vmatprep.subr.bf16.mxu0 %v1197_v16  ;;  %v959_v29 = vld [vmem:[%s1524_s2] ss:$0 sm:$0xff]  ;;  %s1126_s22 = scalar_lea.vmem %s1475_s23, 256  ;;  %p1550_p11 = scmp.ne.s32.totalorder %s1547_s20, 0 }
  0x3f   : > { %1010 = vmatprep.subr.bf16.mxu1 %v1197_v16  ;;  %v963_v34 = vld [vmem:[%s1528_s6] ss:$0 sm:$0xff]  ;;  %p1127_p6 = scmp.ne.s32.totalorder %s1475_s23, %s1126_s22  ;;  %s1199_s14 = smov [#allocation5]  }
  0x40   : > { %469 = vadd.xlane.f32.xlu0 %v468_v3  ;;  %s1130_s17 = sshll.u32 %s1199_s14, 4  ;;  %s1131_s17 = int_to_ptr.vmem [resolvable:$false] %s1130_s17 }
  0x41   : > { %p1128_p12 = pnand %p1127_p6, %p1550_p11  ;;  %s1132_s19 = scalar_lea.vmem %s1131_s17, 512 }
  0x42   : > { %p1133_p8 = scmp.lt.s32.totalorder %s1475_s23, %s1131_s17  ;;  %p1134_p10 = scmp.lt.s32.totalorder %s1132_s19, %s1126_s22 }
  0x43   : > { %p1129_p13 = pneg %p1128_p12 }
  0x44   : > { %p1135_p0 = por %p1134_p10, %p1133_p8 }
  0x46   : > { %p1136_p2 = pnand %p1135_p0, %p1129_p13 }
  0xc9   : > { %v467_v4 = vpop.xlane.xlu0 %466 }
  0xca   : > { %v472_v5 = vmul.f32 0.0625, %v467_v4 }
  0xcc   : > { %v474_v6 = vsub.f32 %v1386_v0, %v472_v5 }
  0xcd   : > { %v470_v7 = vpop.xlane.xlu0 %469 }
  0xce   : > { %v473_v8 = vmul.f32 0.0625, %v470_v7  ;;  %v476_v9 = vmul.f32 %v474_v6, %v474_v6 }
  0xd0   : > { %v475_v10 = vsub.f32 %v1388_v1, %v473_v8  ;;  %v478_v11 = vsel %vm464_vm0, %v476_v9, 0.0 }
  0xd1   : > { %479 = vadd.xlane.f32.xlu1 %v478_v11 }
  0xd2   : > { %v477_v12 = vmul.f32 %v475_v10, %v475_v10 }
  0xd4   : > { %v481_v13 = vsel %vm464_vm0, %v477_v12, 0.0 }
  0xd5   : > { %482 = vadd.xlane.f32.xlu1 %v481_v13  ;;  %v966_v13 = vld [vmem:[%s1529_s7] ss:$0 sm:$0xff] }
 0x15e   : > { %v480_v17 = vpop.xlane.xlu1 %479 }
 0x15f   : > { %v484_v18 = vmul.f32 0.0625, %v480_v17 }
 0x161   : > { %v486_v19 = vadd.f32 1e-05, %v484_v18  ;;  %v967_v18 = vld [vmem:[%s1530_s8] ss:$0 sm:$0xff] }
 0x162   : > { %v483_v20 = vpop.xlane.xlu1 %482 }
 0x163   : > { %1080 = vrsqrt.f32 %v486_v19  ;;  %v485_v21 = vmul.f32 0.0625, %v483_v20 }
 0x165   : > { %v487_v22 = vadd.f32 1e-05, %v485_v21 }
 0x167   : > { %1082 = vrsqrt.f32 %v487_v22 }
 0x16d   : > { %v1081_v23 = vpop.eup %1080 }
 0x16e   : > { %v490_v24 = vmul.f32 %v1081_v23, %v474_v6 }
 0x170   : > { %v499_v28 = vmul.f32 %v958_v25, %v490_v24 }
 0x171   : > { %v1083_v26 = vpop.eup %1082 }
 0x172   : > { %v491_v27 = vmul.f32 %v1083_v26, %v475_v10  ;;  %v508_v31 = vadd.f32 %v959_v29, %v499_v28  ;;  %v1079_v28 = vld [vmem:[%s1533_s11 + $0x8] sm:$0xff]  }
 0x174   : > { %v500_v30 = vmul.f32 %v958_v25, %v491_v27  ;;  %v693_v25 = vld [vmem:[%s1531_s9] sm:$0xf] }
 0x175   : > { %v1078_v27 = vld [vmem:[%s1533_s11] sm:$0xff]  }
 0x176   : > { %v509_v32 = vadd.f32 %v959_v29, %v500_v30  ;;  %v960_v29 = vld [vmem:[%s1526_s4] ss:$0 sm:$0xff] }
 0x178   : > { %v510_v33 = vpack.c.bf16 %v509_v32, %v508_v31 }
 0x17a   : > { %995 = vmatmul.mubr.msk.bf16.vlgmr.msra.gmra.mrb[0].mxu0 %vm464_vm0, %v510_v33  ;;  %1001 = vmatmul.mubr.msk.bf16.vlgmr.msra.gmra.mrb[0].mxu1 %vm464_vm0, %v510_v33 }
 0x17b   : > { %1006 = vmatprep.mubr.msk.bf16.mxu0 %vm1198_vm1, %v1197_v16  ;;  %1012 = vmatprep.mubr.msk.bf16.mxu1 %vm1198_vm1, %v1197_v16 }
 0x24d   : > { %v1427_v35 = vpop.f32.mrb[0].mxu0  ;;  %v619_v36 = vpop.f32.mrb[0].mxu1 }
 0x24e   : > { %v620_v37 = vadd.f32 %v963_v34, %v619_v36  ;;  %v996_v38 = vpop.f32.mrb[1].mxu0  ;;  %v1002_v39 = vpop.f32.mrb[1].mxu1  ;;  %v564_v30 = vadd.f32 %v960_v29, %v1427_v35 }
 0x24f   : > { %v1429_v40 = vpop.f32.mrb[2].mxu0  ;;  %v622_v41 = vpop.f32.mrb[2].mxu1 }
 0x250   : > { %v638_v42 = vmul.f32 0.70710677, %v620_v37  ;;  %v623_v43 = vadd.f32 %v963_v34, %v622_v41  ;;  %v997_v44 = vpop.f32.mrb[3].mxu0  ;;  %v1003_v45 = vpop.f32.mrb[3].mxu1  ;;  %v636_v48 = vmul.f32 0.5, %v620_v37  ;;  %v567_v31 = vadd.f32 %v960_v29, %v1429_v40  ;;  %v694_v37 = vld [vmem:[%s1532_s10] sm:$0xff] }
 0x251   : > { %v628_v32 = vmul.f32 0.70710677, %v564_v30  ;;  %v626_v38 = vmul.f32 0.5, %v564_v30 }
 0x252   : > { %1084 = verf.f32 %v638_v42  ;;  %v639_v46 = vmul.f32 0.70710677, %v623_v43  ;;  %v637_v52 = vmul.f32 0.5, %v623_v43  ;;  %v629_v33 = vmul.f32 0.70710677, %v567_v31 }
 0x253   : > { %v627_v42 = vmul.f32 0.5, %v567_v31 }
 0x254   : > { %1086 = verf.f32 %v639_v46 }
 0x25c   : > { %v1085_v47 = vpop.eup %1084 }
 0x25d   : > { %v642_v49 = vadd.f32 1.0, %v1085_v47 }
 0x25e   : > { %v1087_v50 = vpop.eup %1086 }
 0x25f   : > { %v644_v51 = vmul.f32 %v642_v49, %v636_v48  ;;  %v643_v53 = vadd.f32 1.0, %v1087_v50 }
 0x261   : > { %v647_v54 = vsel %vm646_vm2, %v644_v51, 0.0  ;;  %v645_v55 = vmul.f32 %v643_v53, %v637_v52 }
 0x262   : > { %648 = vadd.xlane.f32.xlu0 %v647_v54 }
 0x263   : > { %v650_v56 = vsel %vm646_vm2, %v645_v55, 0.0 }
 0x264   : > { %651 = vadd.xlane.f32.xlu1 %v650_v56 }
 0x2ef   : > { %v649_v57 = vpop.xlane.xlu0 %648 }
 0x2f0   : > { %v654_v58 = vmul.f32 0.03125, %v649_v57 }
 0x2f1   : > { %v652_v60 = vpop.xlane.xlu1 %651 }
 0x2f2   : > { %v656_v59 = vsub.f32 %v644_v51, %v654_v58  ;;  %v655_v61 = vmul.f32 0.03125, %v652_v60 }
 0x2f4   : > { %v658_v62 = vmul.f32 %v656_v59, %v656_v59  ;;  %v657_v63 = vsub.f32 %v645_v55, %v655_v61  ;;  %v970_v55 = vld [vmem:[%s1534_s12] ss:$0 sm:$0xff] }
 0x2f6   : > { %v660_v2 = vsel %vm646_vm2, %v658_v62, 0.0  ;;  %v659_v3 = vmul.f32 %v657_v63, %v657_v63 }
 0x2f7   : > { %661 = vadd.xlane.f32.xlu0 %v660_v2 }
 0x2f8   : > { %v663_v4 = vsel %vm646_vm2, %v659_v3, 0.0 }
 0x2f9   : > { %664 = vadd.xlane.f32.xlu1 %v663_v4 }
 0x384   : > { %v662_v5 = vpop.xlane.xlu0 %661 }
 0x385   : > { %v666_v6 = vmul.f32 0.03125, %v662_v5 }
 0x386   : > { %v665_v8 = vpop.xlane.xlu1 %664 }
 0x387   : > { %v668_v7 = vadd.f32 1e-05, %v666_v6  ;;  %v667_v9 = vmul.f32 0.03125, %v665_v8 }
 0x389   : > { %1088 = vrsqrt.f32 %v668_v7  ;;  %v669_v10 = vadd.f32 1e-05, %v667_v9 }
 0x38b   : > { %1090 = vrsqrt.f32 %v669_v10 }
 0x38c   : > { %1092 = verf.f32 %v628_v32 }
 0x38d   : > { %1094 = verf.f32 %v629_v33 }
 0x393   : > { %v1089_v11 = vpop.eup %1088 }
 0x394   : > { %v672_v12 = vmul.f32 %v1089_v11, %v656_v59 }
 0x395   : > { %v1091_v14 = vpop.eup %1090 }
 0x396   : > { %v673_v15 = vmul.f32 %v1091_v14, %v657_v63  ;;  %v681_v17 = vmul.f32 %v966_v13, %v672_v12  ;;  %v1093_v34 = vpop.eup %1092 }
 0x397   : > { %v1095_v36 = vpop.eup %1094 }
 0x398   : > { %v682_v19 = vmul.f32 %v966_v13, %v673_v15  ;;  %v690_v20 = vadd.f32 %v967_v18, %v681_v17  ;;  %v633_v39 = vadd.f32 1.0, %v1095_v36 }
 0x39a   : > { %v691_v21 = vadd.f32 %v967_v18, %v682_v19  ;;  %v635_v47 = vmul.f32 %v633_v39, %v627_v42 }
 0x39c   : > { %v692_v22 = vpack.c.bf16 %v691_v21, %v690_v20 }
 0x39e   : > { %v701_v23 = vsel %vm699_vm3, %v692_v22, 0  ;;  %v745_v24 = vrot.slane %v692_v22, 4 }
 0x39f   : > { %1005 = vmatpush3.bf16.msra.mxu0 %v701_v23 }
 0x3a0   : > { %v747_v26 = vsel %vm699_vm3, %v745_v24, 0  ;;  %1016 = vmatprep.subr.bf16.mxu0 %v1197_v16 }
 0x3a1   : > { %1011 = vmatpush3.bf16.msra.mxu1 %v747_v26 }
 0x3a2   : > { %1007 = vmatmul.mubr.msk.bf16.vlgmr.msra.gmra.mrb[4].mxu0 %vm695_vm4, %v693_v25 }
 0x3a3   : > { %1020 = vmatprep.mubr.msk.bf16.mxu0 %vm1198_vm1, %v1197_v16  ;;  %1017 = vmatpush3.bf16.msra.mxu0 %v1078_v27 }
 0x3a4   : > { %1013 = vmatmul.mubr.msk.bf16.vlgmr.msra.gmra.mrb[4].mxu1 %vm695_vm4, %v693_v25  ;;  %1018 = vmatprep.subr.bf16.mxu0 %v1197_v16  ;;  %v632_v16 = vadd.f32 1.0, %v1093_v34 }
 0x3a6   : > { %v634_v43 = vmul.f32 %v632_v16, %v626_v38 }
 0x3a7   : > { %1019 = vmatpush3.bf16.msra.mxu0 %v1079_v28 }
 0x475   : > { %v737_v41 = vpop.f32.mrb[4].mxu0 }
 0x476   : > { %v738_v44 = vadd.f32 %v737_v41, %v694_v37  ;;  %v1008_v35 = vpop.f32.mrb[5].mxu0 }
 0x477   : > { %v783_v45 = vpop.f32.mrb[4].mxu1  ;;  %v740_v40 = vpop.f32.mrb[6].mxu0 }
 0x478   : > { %v743_v46 = vmul.f32 %v738_v44, %v634_v43  ;;  %v784_v48 = vadd.f32 %v783_v45, %v694_v37  ;;  %v1014_v49 = vpop.f32.mrb[5].mxu1  ;;  %v1009_v50 = vpop.f32.mrb[7].mxu0 }
 0x479   : > { %v786_v51 = vpop.f32.mrb[6].mxu1 }
 0x47a   : > { %v789_v52 = vmul.f32 %v784_v48, %v635_v47  ;;  %v1015_v53 = vpop.f32.mrb[7].mxu1 }
 0x47c   : > { %v790_v54 = vpack.c.bf16 %v789_v52, %v743_v46 }
 0x47e   : > { %1021 = vmatmul.mubr.msk.bf16.vlgmr.msra.gmra.mrb[8].mxu0 %vm646_vm2, %v790_v54 }
 0x551   : > { %v851_v56 = vpop.f32.mrb[8].mxu0 }
 0x552   : > { %v852_v57 = vadd.f32 %v970_v55, %v851_v56  ;;  %v1022_v58 = vpop.f32.mrb[9].mxu0 }
 0x553   : > { %v854_v59 = vpop.f32.mrb[10].mxu0 }
 0x554   : > { %v858_v60 = vadd.f32 %v852_v57, %v1386_v0  ;;  %v855_v61 = vadd.f32 %v970_v55, %v854_v59  ;;  %v1023_v62 = vpop.f32.mrb[11].mxu0 }
 0x556   : > { %860 = vst.msk [vmem:[%s458_s24] sm:$0xff] %vm464_vm0, %v858_v60  ;;  %v859_v63 = vadd.f32 %v855_v61, %v1388_v1 }
 0x558   : > { %861 = vst.msk [vmem:[%s458_s24 + $0x8] sm:$0xff] %vm464_vm0, %v859_v63 }
 0x559   : > { %1139 = shalt.err (!%p1136_p2)
}
 0x55a   : > { %s1140_s16 = scalar_lea.hbm %s1473_s27, 256  ;;  %s1144_s18 = scalar_lea.hbm %s1535_s13, 512 }
 0x55b   : > { %p1141_p4 = scmp.ne.s32.totalorder %s1473_s27, %s1140_s16  ;;  %p1145_p9 = scmp.lt.u32.totalorder %s1473_s27, %s1535_s13 }
 0x55c   : > { %p1146_p1 = scmp.lt.u32.totalorder %s1144_s18, %s1140_s16  ;;  %p1148_p6 = scmp.lt.u32.totalorder %s1140_s16, %s1473_s27 }
 0x55d   : > { %p1142_p5 = pnand %p1141_p4, %p1550_p11 }
 0x55e   : > { %p1147_p3 = por %p1146_p1, %p1145_p9 }
 0x55f   : > { %p1143_p7 = pneg %p1142_p5 }
 0x560   : > { %p1149_p12 = por %p1148_p6, %p1147_p3 }
 0x562   : > { %p1150_p13 = pnand %p1149_p12, %p1143_p7 }
 0x564   : > { %1153 = shalt.err (!%p1150_p13)
}
 0x565   : > { %s1200_s22 = smov 128   ;;  %s1201_s17 = smov 8  }
 0x566   : > { %1026 = dma.vmem_to_hbm [thread:$0]  (%p1550_p11), %s1475_s23, 256, %s1473_s27, %s863_s29, %s1200_s22, %s1200_s22, %s1201_s17  }
 0x567 PF: > { %s1551_s19 = sld [smem:[#allocation8_spill]]  ;;  %p1552_p8 = scmp.ne.s32.totalorder %s1548_s21, 0 }
 0x568   : > { %p1553_p10 = scmp.ge.s32.totalorder %s1192_s28, 2 }
 0x56a   : > { %p1033_p0 = pnand %p1553_p10, %p1552_p8 }
 0x56d   : > { %s891_s15 = sand.u32 1, %s1551_s19  }
 0x56e   : > { %s892_s16 = scalar_lea.sflag [#allocation4], %s891_s15 }
 0x56f   : > { %1175 = dma.done.wait (!%p1033_p0), %s892_s16, 256  }
 0x570   : > { %1177 = vsyncadd (!%p1033_p0), %s892_s16, 4294967040  ;;  %s1554_s28 = sld [smem:[#allocation10_spill]]  ;;  %s1555_s24 = sld [smem:[#allocation9_spill]] }
 0x571   : > { %s1556_s27 = sld [smem:[#allocation11_spill]]  ;;  %s1557_s25 = smov %s1184_s26 }
 0x576   : > { %p26_p2 = scmp.ge.s32.totalorder %s1554_s28, 4   ;;  %s1558_s26 = smov %s1555_s24 }
 0x578   :  { %28 = sbr.rel (!%p26_p2) target bundleno = 5 (0x5), region = 117 }
 0x57f   :  { %897 = vsyncpa [#allocation3], 1 }
 0x580   :  { %899 = vsyncpa [#allocation3 + $0x1], 1 }
 0x581   :  { %900 = vsyncpa [#allocation4], 1 }
 0x582   :  { %902 = vsyncpa [#allocation4 + $0x1], 1 }

</bundles_post_ra>
